<compile_context>
chip_gen: v5e
topology: v5e:2x2
jax: 0.10.0
libtpu: 0.0.40
codegen_flags: <defaults>
</compile_context>

<pallas_src>
import functools

import jax
import jax.numpy as jnp
from jax.experimental import pallas as pl
from jax.experimental.pallas import tpu as pltpu


_NEG = -1e9     # logit padding value (exp underflows to exactly 0 in f32)
_TILE_N = 512   # lanes (frames) per grid step; multiple of 128


def _round_up(x, m):
    return ((x + m - 1) // m) * m


# ------------------------------ fused kernel --------------------------------


def _criterion_kernel(pred_ref, labels_ref, scores_ref, pos_ref, neg_ref,
                      ce_ref, corr_ref, sal_ref, *,
                      n_classes, class_weights, margin, n_pairs):
    """Per-tile partial sums for all three losses.

    pred_ref   : (Cp, TILE_N) lane-dense logits (classes on sublanes, frames on lanes)
    labels_ref : (1,  TILE_N) int32 frame labels, -1 on padded lanes
    scores_ref : (BL,)  f32 flattened saliency scores in SMEM
    pos_ref    : (BK,)  int32 flattened positive indices in SMEM
    neg_ref    : (BK,)  int32 flattened negative indices in SMEM
    ce_ref / corr_ref / sal_ref : (1, 1) SMEM per-tile partial outputs
    """
    pred = pred_ref[...].astype(jnp.float32)                  # (Cp, Tn)
    labels = labels_ref[...]                                   # (1,  Tn)
    cp, tn = pred.shape

    cls_iota = jax.lax.broadcasted_iota(jnp.int32, (cp, tn), 0)
    match = cls_iota == labels                                  # true-class mask

    # stable log-softmax over the (8-sublane) class axis — VPU/XLU, no MXU.
    m = jnp.max(pred, axis=0, keepdims=True)                    # (1, Tn)
    lse = m + jnp.log(jnp.sum(jnp.exp(pred - m), axis=0, keepdims=True))
    logit_y = jnp.sum(jnp.where(match, pred, 0.0), axis=0, keepdims=True)

    # per-frame CE weight via static where-chain; padded lanes (label=-1) -> 0,
    # which also folds the validity mask into the CE sum.
    w_y = jnp.zeros(labels.shape, jnp.float32)
    for c in range(n_classes):
        w_y = jnp.where(labels == c, jnp.float32(class_weights[c]), w_y)

    # partial sum of w[y] * (logsumexp - logit_y) for this tile
    ce_ref[0, 0] = jnp.sum(w_y * (lse - logit_y))

    # classification correctness: true-class logit attains the row max.
    correct = jnp.where((labels >= 0) & (logit_y == m), 1.0, 0.0)
    corr_ref[0, 0] = jnp.sum(correct)

    # saliency hinge: pure scalar gather over SMEM tables, only on grid step 0.
    @pl.when(pl.program_id(0) == 0)
    def _():
        def body(i, acc):
            d = scores_ref[neg_ref[i]] - scores_ref[pos_ref[i]]
            return acc + jnp.maximum(jnp.float32(margin) + d, jnp.float32(0.0))

        hinge_sum = jax.lax.fori_loop(0, n_pairs, body, jnp.float32(0.0),
                                      unroll=True)
        # QD-DETR normalization: sum / (batch * n_pairs) * 2
        sal_ref[0, 0] = hinge_sum * jnp.float32(2.0 / n_pairs)

    @pl.when(pl.program_id(0) != 0)
    def _():
        sal_ref[0, 0] = jnp.float32(0.0)


# ----------------------------- kernel wrapper --------------------------------


@functools.partial(jax.jit, static_argnums=(5, 6))
def criterion_losses(frame_pred, frame_labels, saliency_scores,
                     pos_idx, neg_idx, class_weights, margin):
    """Layout plumbing + one fused pallas_call; returns (loss_ce, class_err, loss_sal).

    The transpose/pad/reshape and the final tiny partial-sum reduction run under
    the same jit as the pallas_call so they fuse with the kernel's DMA.
    """
    B, T, C = frame_pred.shape
    n = B * T
    n_pad = _round_up(max(n, _TILE_N), _TILE_N)
    c_pad = _round_up(max(C, 8), 8)
    grid_n = n_pad // _TILE_N

    # lane-dense layout: classes -> sublanes, frames -> lanes
    pred_t = jnp.transpose(jnp.reshape(frame_pred, (n, C)))            # (C, n)
    pred_t = jnp.pad(pred_t, ((0, c_pad - C), (0, n_pad - n)),
                     constant_values=_NEG)
    labels = jnp.reshape(frame_labels.astype(jnp.int32), (1, n))
    labels = jnp.pad(labels, ((0, 0), (0, n_pad - n)), constant_values=-1)

    # flattened saliency tables (SMEM scalar path; no 128-lane padding needed)
    bs, l = saliency_scores.shape
    k = pos_idx.shape[1]
    scores_flat = jnp.reshape(saliency_scores.astype(jnp.float32), (bs * l,))
    row_off = (jnp.arange(bs, dtype=jnp.int32) * l)[:, None]            # (B, 1)
    pos_flat = jnp.reshape(pos_idx.astype(jnp.int32) + row_off, (bs * k,))
    neg_flat = jnp.reshape(neg_idx.astype(jnp.int32) + row_off, (bs * k,))

    kernel = functools.partial(
        _criterion_kernel,
        n_classes=C,
        class_weights=tuple(float(w) for w in class_weights),
        margin=float(margin), n_pairs=bs * k)

    smem = pltpu.MemorySpace.SMEM
    part = jax.ShapeDtypeStruct((grid_n, 1), jnp.float32)
    scalar_out = pl.BlockSpec((1, 1), lambda i: (i, 0), memory_space=smem)

    ce_p, corr_p, sal_p = pl.pallas_call(
        kernel,
        grid=(grid_n,),
        in_specs=[
            pl.BlockSpec((c_pad, _TILE_N), lambda i: (0, i)),   # logits tile
            pl.BlockSpec((1, _TILE_N), lambda i: (0, i)),       # labels tile
            pl.BlockSpec(memory_space=smem),                    # saliency scores
            pl.BlockSpec(memory_space=smem),                    # pos indices
            pl.BlockSpec(memory_space=smem),                    # neg indices
        ],
        out_specs=[scalar_out, scalar_out, scalar_out],
        out_shape=(part, part, part),
        compiler_params=pltpu.CompilerParams(
            dimension_semantics=("parallel",)),
    )(pred_t, labels, scores_flat, pos_flat, neg_flat)

    # tiny final reduction over the per-tile partial sums (grid_n values each)
    inv_n = 1.0 / float(n)
    loss_ce = jnp.sum(ce_p) * inv_n          # mean over B*T frames
    class_err = 100.0 - 100.0 * jnp.sum(corr_p) * inv_n
    loss_sal = jnp.sum(sal_p)
    return loss_ce, class_err, loss_sal


# ----------------------------- SetCriterion (JAX) ---------------------------


class SetCriterion:
    """OL-QD-DETR criterion: frame-label weighted CE + saliency hinge loss."""

    def __init__(self, matcher, weight_dict, eos_coef, losses, span_loss_type,
                 max_v_l, saliency_margin=1, temporal_consistency_weight=0.1):
        self.matcher = matcher
        self.weight_dict = weight_dict
        self.losses = losses
        self.span_loss_type = span_loss_type
        self.max_v_l = max_v_l
        self.saliency_margin = saliency_margin
        self.temporal_consistency_weight = temporal_consistency_weight
        self.eos_coef = eos_coef
        # deterministic constants from __init__ (frame-class CE weights);
        # static tuple so they fold directly into the kernel (no weight tensor).
        self.frame_class_weights = (10.0, 10.0, 10.0, 0.1)

    def __call__(self, outputs, targets):
        has_sal = ('saliency_scores' in outputs
                   and 'saliency_pos_labels' in targets)
        if has_sal:
            sal_scores = outputs['saliency_scores']
            sal_pos = targets['saliency_pos_labels']
            sal_neg = targets['saliency_neg_labels']
        else:
            # dummy scalar-gather inputs; result discarded below (cheap).
            sal_scores = jnp.zeros((1, 1), jnp.float32)
            sal_pos = jnp.zeros((1, 1), jnp.int32)
            sal_neg = jnp.zeros((1, 1), jnp.int32)

        loss_ce, class_err, loss_sal = criterion_losses(
            outputs['frame_pred'], targets['frame_labels'],
            sal_scores, sal_pos, sal_neg,
            self.frame_class_weights, float(self.saliency_margin))

        losses = {}
        if 'frame_labels' in self.losses:
            losses['loss_frame_label'] = loss_ce
            losses['frame_class_error'] = class_err
        if 'saliency' in self.losses:
            losses['loss_saliency'] = loss_sal if has_sal else 0

        # TODO(synk): matcher-based span/label/aux losses are not exercised by
        # this forward (indices=None; only frame_labels + saliency requested).
        total_loss = sum(losses[k] * self.weight_dict[k]
                         for k in losses if k in self.weight_dict)
        return total_loss, losses


# ---------------------------------- main ------------------------------------

if __name__ == "__main__":
    B, T, C = 2, 8, 4      # batch, frames, frame classes
    L, K = 8, 2            # saliency length, #pos/#neg indices per sample

    key = jax.random.PRNGKey(0)
    k1, k2, k3, k4, k5 = jax.random.split(key, 5)

    # TODO(synk): the QDDETR transformer/encoder forward that produces
    # frame_pred / saliency_scores is not a Pallas kernel here; this kernel
    # fuses the criterion losses consumed from those outputs.
    frame_pred = jax.random.normal(k1, (B, T, C), dtype=jnp.float32)
    frame_labels = jax.random.randint(k2, (B, T), 0, C, dtype=jnp.int32)
    saliency_scores = jax.random.normal(k3, (B, L), dtype=jnp.float32)
    pos_idx = jax.random.randint(k4, (B, K), 0, L, dtype=jnp.int32)
    neg_idx = jax.random.randint(k5, (B, K), 0, L, dtype=jnp.int32)

    outputs = {'frame_pred': frame_pred, 'saliency_scores': saliency_scores}
    targets = {'frame_labels': frame_labels,
               'saliency_pos_labels': pos_idx,
               'saliency_neg_labels': neg_idx}

    criterion = SetCriterion(
        matcher=None,
        weight_dict={'loss_frame_label': 4.0, 'loss_saliency': 1.0},
        eos_coef=0.1,
        losses=['frame_labels', 'saliency'],
        span_loss_type='l1',
        max_v_l=75,
        saliency_margin=1,
    )

    total_loss, loss_dict = criterion(outputs, targets)
    total_loss = jax.block_until_ready(total_loss)
    for v in loss_dict.values():
        jax.block_until_ready(v)
    print("KERNEL_OK")
</pallas_src>

<mosaic_0001>
module attributes {stable_mosaic.version = 11 : i64} {
  func.func @_criterion_kernel(%arg0: i32, %arg1: memref<8x512xf32, #tpu.memory_space<vmem>>, %arg2: memref<1x512xi32, #tpu.memory_space<vmem>>, %arg3: memref<16xf32, #tpu.memory_space<smem>>, %arg4: memref<4xi32, #tpu.memory_space<smem>>, %arg5: memref<4xi32, #tpu.memory_space<smem>>, %arg6: memref<1x1xf32, #tpu.memory_space<smem>>, %arg7: memref<1x1xf32, #tpu.memory_space<smem>>, %arg8: memref<1x1xf32, #tpu.memory_space<smem>>) attributes {dimension_semantics = [#tpu.dimension_semantics<parallel>], iteration_bounds = array<i64: 1>, scalar_prefetch = 0 : i64, scratch_operands = 0 : i64, tpu.core_type = #tpu.core_type<tc>, window_params = [{transform_indices = @transform_0, window_bounds = array<i64: 8, 512>}, {transform_indices = @transform_1, window_bounds = array<i64: 1, 512>}, {transform_indices = @transform_2, window_bounds = array<i64: 16>}, {transform_indices = @transform_3, window_bounds = array<i64: 4>}, {transform_indices = @transform_4, window_bounds = array<i64: 4>}, {transform_indices = @transform_5, window_bounds = array<i64: 1, 1>}, {transform_indices = @transform_6, window_bounds = array<i64: 1, 1>}, {transform_indices = @transform_7, window_bounds = array<i64: 1, 1>}]} {
    %c0 = arith.constant 0 : index
    %c0_0 = arith.constant 0 : index
    %0 = vector.load %arg1[%c0, %c0_0] : memref<8x512xf32, #tpu.memory_space<vmem>>, vector<8x512xf32>
    %c0_1 = arith.constant 0 : index
    %c0_2 = arith.constant 0 : index
    %1 = vector.load %arg2[%c0_1, %c0_2] : memref<1x512xi32, #tpu.memory_space<vmem>>, vector<1x512xi32>
    %2 = tpu.iota {dimensions = array<i32: 0>} : vector<8x512xi32>
    %3 = vector.broadcast %1 : vector<1x512xi32> to vector<8x512xi32>
    %4 = arith.cmpi eq, %2, %3 : vector<8x512xi32>
    %cst = arith.constant dense<0xFF800000> : vector<512xf32>
    %5 = vector.multi_reduction <maximumf>, %0, %cst [0] : vector<8x512xf32> to vector<512xf32>
    %6 = vector.shape_cast %5 : vector<512xf32> to vector<1x512xf32>
    %7 = vector.broadcast %6 : vector<1x512xf32> to vector<8x512xf32>
    %8 = arith.subf %0, %7 : vector<8x512xf32>
    %9 = math.exp %8 : vector<8x512xf32>
    %cst_3 = arith.constant dense<0.000000e+00> : vector<512xf32>
    %10 = vector.multi_reduction <add>, %9, %cst_3 [0] : vector<8x512xf32> to vector<512xf32>
    %11 = vector.shape_cast %10 : vector<512xf32> to vector<1x512xf32>
    %12 = math.log %11 : vector<1x512xf32>
    %13 = arith.addf %6, %12 : vector<1x512xf32>
    %cst_4 = arith.constant 0.000000e+00 : f32
    %14 = vector.broadcast %cst_4 : f32 to vector<8x512xf32>
    %15 = arith.select %4, %0, %14 : vector<8x512xi1>, vector<8x512xf32>
    %cst_5 = arith.constant dense<0.000000e+00> : vector<512xf32>
    %16 = vector.multi_reduction <add>, %15, %cst_5 [0] : vector<8x512xf32> to vector<512xf32>
    %17 = vector.shape_cast %16 : vector<512xf32> to vector<1x512xf32>
    %cst_6 = arith.constant 0.000000e+00 : f32
    %18 = vector.broadcast %cst_6 : f32 to vector<1x512xf32>
    %c0_i32 = arith.constant 0 : i32
    %19 = vector.broadcast %c0_i32 : i32 to vector<1x512xi32>
    %20 = arith.cmpi eq, %1, %19 : vector<1x512xi32>
    %cst_7 = arith.constant 1.000000e+01 : f32
    %21 = vector.broadcast %cst_7 : f32 to vector<1x512xf32>
    %22 = arith.select %20, %21, %18 : vector<1x512xi1>, vector<1x512xf32>
    %c1_i32 = arith.constant 1 : i32
    %23 = vector.broadcast %c1_i32 : i32 to vector<1x512xi32>
    %24 = arith.cmpi eq, %1, %23 : vector<1x512xi32>
    %cst_8 = arith.constant 1.000000e+01 : f32
    %25 = vector.broadcast %cst_8 : f32 to vector<1x512xf32>
    %26 = arith.select %24, %25, %22 : vector<1x512xi1>, vector<1x512xf32>
    %c2_i32 = arith.constant 2 : i32
    %27 = vector.broadcast %c2_i32 : i32 to vector<1x512xi32>
    %28 = arith.cmpi eq, %1, %27 : vector<1x512xi32>
    %cst_9 = arith.constant 1.000000e+01 : f32
    %29 = vector.broadcast %cst_9 : f32 to vector<1x512xf32>
    %30 = arith.select %28, %29, %26 : vector<1x512xi1>, vector<1x512xf32>
    %c3_i32 = arith.constant 3 : i32
    %31 = vector.broadcast %c3_i32 : i32 to vector<1x512xi32>
    %32 = arith.cmpi eq, %1, %31 : vector<1x512xi32>
    %cst_10 = arith.constant 1.000000e-01 : f32
    %33 = vector.broadcast %cst_10 : f32 to vector<1x512xf32>
    %34 = arith.select %32, %33, %30 : vector<1x512xi1>, vector<1x512xf32>
    %35 = arith.subf %13, %17 : vector<1x512xf32>
    %36 = arith.mulf %34, %35 : vector<1x512xf32>
    %37 = vector.shape_cast %36 : vector<1x512xf32> to vector<1x1x512xf32>
    %cst_11 = arith.constant dense<0.000000e+00> : vector<1xf32>
    %38 = vector.multi_reduction <add>, %37, %cst_11 [1, 2] : vector<1x1x512xf32> to vector<1xf32>
    %39 = vector.shape_cast %38 : vector<1xf32> to vector<1x1x1xf32>
    %40 = vector.extract %39[0, 0, 0] : f32 from vector<1x1x1xf32>
    %c0_12 = arith.constant 0 : index
    %c0_13 = arith.constant 0 : index
    %41 = memref.load %arg6[%c0_12, %c0_13] : memref<1x1xf32, #tpu.memory_space<smem>>
    memref.store %40, %arg6[%c0_12, %c0_13] : memref<1x1xf32, #tpu.memory_space<smem>>
    %c0_i32_14 = arith.constant 0 : i32
    %42 = vector.broadcast %c0_i32_14 : i32 to vector<1x512xi32>
    %43 = arith.cmpi sge, %1, %42 : vector<1x512xi32>
    %44 = arith.cmpf oeq, %17, %6 : vector<1x512xf32>
    %45 = arith.andi %43, %44 : vector<1x512xi1>
    %cst_15 = arith.constant 1.000000e+00 : f32
    %cst_16 = arith.constant 0.000000e+00 : f32
    %46 = vector.broadcast %cst_15 : f32 to vector<1x512xf32>
    %47 = vector.broadcast %cst_16 : f32 to vector<1x512xf32>
    %48 = arith.select %45, %46, %47 : vector<1x512xi1>, vector<1x512xf32>
    %49 = vector.shape_cast %48 : vector<1x512xf32> to vector<1x1x512xf32>
    %cst_17 = arith.constant dense<0.000000e+00> : vector<1xf32>
    %50 = vector.multi_reduction <add>, %49, %cst_17 [1, 2] : vector<1x1x512xf32> to vector<1xf32>
    %51 = vector.shape_cast %50 : vector<1xf32> to vector<1x1x1xf32>
    %52 = vector.extract %51[0, 0, 0] : f32 from vector<1x1x1xf32>
    %c0_18 = arith.constant 0 : index
    %c0_19 = arith.constant 0 : index
    %53 = memref.load %arg7[%c0_18, %c0_19] : memref<1x1xf32, #tpu.memory_space<smem>>
    memref.store %52, %arg7[%c0_18, %c0_19] : memref<1x1xf32, #tpu.memory_space<smem>>
    %c0_i32_20 = arith.constant 0 : i32
    %54 = arith.cmpi eq, %arg0, %c0_i32_20 : i32
    %55 = arith.extui %54 : i1 to i32
    %c0_i32_21 = arith.constant 0 : i32
    %56 = arith.cmpi ne, %55, %c0_i32_21 : i32
    scf.if %56 {
      %cst_24 = arith.constant 0.000000e+00 : f32
      %c0_i32_25 = arith.constant 0 : i32
      %60 = arith.index_cast %c0_i32_25 : i32 to index
      %61 = memref.load %arg5[%60] : memref<4xi32, #tpu.memory_space<smem>>
      %62 = arith.index_cast %61 : i32 to index
      %63 = memref.load %arg3[%62] : memref<16xf32, #tpu.memory_space<smem>>
      %64 = arith.index_cast %c0_i32_25 : i32 to index
      %65 = memref.load %arg4[%64] : memref<4xi32, #tpu.memory_space<smem>>
      %66 = arith.index_cast %65 : i32 to index
      %67 = memref.load %arg3[%66] : memref<16xf32, #tpu.memory_space<smem>>
      %68 = arith.subf %63, %67 : f32
      %cst_26 = arith.constant 1.000000e+00 : f32
      %69 = arith.addf %cst_26, %68 : f32
      %cst_27 = arith.constant 0.000000e+00 : f32
      %70 = arith.maximumf %69, %cst_27 : f32
      %71 = arith.addf %cst_24, %70 : f32
      %c1_i32_28 = arith.constant 1 : i32
      %72 = arith.index_cast %c1_i32_28 : i32 to index
      %73 = memref.load %arg5[%72] : memref<4xi32, #tpu.memory_space<smem>>
      %74 = arith.index_cast %73 : i32 to index
      %75 = memref.load %arg3[%74] : memref<16xf32, #tpu.memory_space<smem>>
      %76 = arith.index_cast %c1_i32_28 : i32 to index
      %77 = memref.load %arg4[%76] : memref<4xi32, #tpu.memory_space<smem>>
      %78 = arith.index_cast %77 : i32 to index
      %79 = memref.load %arg3[%78] : memref<16xf32, #tpu.memory_space<smem>>
      %80 = arith.subf %75, %79 : f32
      %cst_29 = arith.constant 1.000000e+00 : f32
      %81 = arith.addf %cst_29, %80 : f32
      %cst_30 = arith.constant 0.000000e+00 : f32
      %82 = arith.maximumf %81, %cst_30 : f32
      %83 = arith.addf %71, %82 : f32
      %c2_i32_31 = arith.constant 2 : i32
      %84 = arith.index_cast %c2_i32_31 : i32 to index
      %85 = memref.load %arg5[%84] : memref<4xi32, #tpu.memory_space<smem>>
      %86 = arith.index_cast %85 : i32 to index
      %87 = memref.load %arg3[%86] : memref<16xf32, #tpu.memory_space<smem>>
      %88 = arith.index_cast %c2_i32_31 : i32 to index
      %89 = memref.load %arg4[%88] : memref<4xi32, #tpu.memory_space<smem>>
      %90 = arith.index_cast %89 : i32 to index
      %91 = memref.load %arg3[%90] : memref<16xf32, #tpu.memory_space<smem>>
      %92 = arith.subf %87, %91 : f32
      %cst_32 = arith.constant 1.000000e+00 : f32
      %93 = arith.addf %cst_32, %92 : f32
      %cst_33 = arith.constant 0.000000e+00 : f32
      %94 = arith.maximumf %93, %cst_33 : f32
      %95 = arith.addf %83, %94 : f32
      %c3_i32_34 = arith.constant 3 : i32
      %96 = arith.index_cast %c3_i32_34 : i32 to index
      %97 = memref.load %arg5[%96] : memref<4xi32, #tpu.memory_space<smem>>
      %98 = arith.index_cast %97 : i32 to index
      %99 = memref.load %arg3[%98] : memref<16xf32, #tpu.memory_space<smem>>
      %100 = arith.index_cast %c3_i32_34 : i32 to index
      %101 = memref.load %arg4[%100] : memref<4xi32, #tpu.memory_space<smem>>
      %102 = arith.index_cast %101 : i32 to index
      %103 = memref.load %arg3[%102] : memref<16xf32, #tpu.memory_space<smem>>
      %104 = arith.subf %99, %103 : f32
      %cst_35 = arith.constant 1.000000e+00 : f32
      %105 = arith.addf %cst_35, %104 : f32
      %cst_36 = arith.constant 0.000000e+00 : f32
      %106 = arith.maximumf %105, %cst_36 : f32
      %107 = arith.addf %95, %106 : f32
      %c4_i32 = arith.constant 4 : i32
      %cst_37 = arith.constant 5.000000e-01 : f32
      %108 = arith.mulf %107, %cst_37 : f32
      %c0_38 = arith.constant 0 : index
      %c0_39 = arith.constant 0 : index
      %109 = memref.load %arg8[%c0_38, %c0_39] : memref<1x1xf32, #tpu.memory_space<smem>>
      memref.store %108, %arg8[%c0_38, %c0_39] : memref<1x1xf32, #tpu.memory_space<smem>>
    } else {
    }
    %c0_i32_22 = arith.constant 0 : i32
    %57 = arith.cmpi ne, %arg0, %c0_i32_22 : i32
    %58 = arith.extui %57 : i1 to i32
    %c0_i32_23 = arith.constant 0 : i32
    %59 = arith.cmpi ne, %58, %c0_i32_23 : i32
    scf.if %59 {
      %cst_24 = arith.constant 0.000000e+00 : f32
      %c0_25 = arith.constant 0 : index
      %c0_26 = arith.constant 0 : index
      %60 = memref.load %arg8[%c0_25, %c0_26] : memref<1x1xf32, #tpu.memory_space<smem>>
      memref.store %cst_24, %arg8[%c0_25, %c0_26] : memref<1x1xf32, #tpu.memory_space<smem>>
    } else {
    }
    return
  }
  func.func @transform_0(%arg0: i32) -> (i32, i32) {
    %c0_i32 = arith.constant 0 : i32
    %c0_i32_0 = arith.constant 0 : i32
    return %c0_i32, %arg0 : i32, i32
  }
  func.func @transform_1(%arg0: i32) -> (i32, i32) {
    %c0_i32 = arith.constant 0 : i32
    %c0_i32_0 = arith.constant 0 : i32
    return %c0_i32, %arg0 : i32, i32
  }
  func.func @transform_2(%arg0: i32) -> i32 {
    %c0_i32 = arith.constant 0 : i32
    %c0_i32_0 = arith.constant 0 : i32
    return %c0_i32 : i32
  }
  func.func @transform_3(%arg0: i32) -> i32 {
    %c0_i32 = arith.constant 0 : i32
    %c0_i32_0 = arith.constant 0 : i32
    return %c0_i32 : i32
  }
  func.func @transform_4(%arg0: i32) -> i32 {
    %c0_i32 = arith.constant 0 : i32
    %c0_i32_0 = arith.constant 0 : i32
    return %c0_i32 : i32
  }
  func.func @transform_5(%arg0: i32) -> (i32, i32) {
    %c0_i32 = arith.constant 0 : i32
    %c0_i32_0 = arith.constant 0 : i32
    return %arg0, %c0_i32 : i32, i32
  }
  func.func @transform_6(%arg0: i32) -> (i32, i32) {
    %c0_i32 = arith.constant 0 : i32
    %c0_i32_0 = arith.constant 0 : i32
    return %arg0, %c0_i32 : i32, i32
  }
  func.func @transform_7(%arg0: i32) -> (i32, i32) {
    %c0_i32 = arith.constant 0 : i32
    %c0_i32_0 = arith.constant 0 : i32
    return %arg0, %c0_i32 : i32, i32
  }
}

</mosaic_0001>

<bundles_post_ra>
// kernel: criterion_losses.1
= control target key start
LH: loop header
LB: loop body
LE: loop exit
PB: predicated region body
PF: predicated region fallthrough
CT: control target
= control target key end

     0   :  { %13 = vsyncpa [#allocation4], 0  ;;  %s624_s0 = inlined_call_operand.vmem [shape: f32[8,512], index: 0, kind: input, shape index: {}]   ;;  %s625_s1 = inlined_call_operand.vmem [shape: s32[1,512], index: 1, kind: input, shape index: {}]   ;;  %s626_s2 = inlined_call_operand.vmem [shape: f32[16], index: 2, kind: input, shape index: {}]   ;;  %s627_s3 = inlined_call_operand.vmem [shape: s32[4], index: 3, kind: input, shape index: {}]   ;;  %s628_s4 = inlined_call_operand.vmem [shape: s32[4], index: 4, kind: input, shape index: {}]   ;;  %s629_s5 = inlined_call_operand.hbm [shape: f32[1,1], index: 5, kind: output, shape index: {0}]   ;;  %s630_s6 = inlined_call_operand.hbm [shape: f32[1,1], index: 6, kind: output, shape index: {1}]   ;;  %s631_s7 = inlined_call_operand.hbm [shape: f32[1,1], index: 7, kind: output, shape index: {2}]  }
   0x1   :  { %14 = vsyncpa [#allocation6], 0 }
   0x2   :  { %15 = vsyncpa [#allocation3], 0  ;;  %s35_s26 = sshll.u32 %s627_s3, 4  ;;  %s36_s26 = int_to_ptr.vmem [resolvable:$true] %s35_s26 }
   0x3   :  { %16 = vsyncpa [#allocation10], 0  ;;  %s26_s29 = sshll.u32 %s626_s2, 4  ;;  %s479_s30 = smov [#allocation5]   ;;  %s27_s29 = int_to_ptr.vmem [resolvable:$true] %s26_s29 }
   0x4   :  { %38 = dma.vmem_to_smem %s36_s26, 16, %s479_s30, [#allocation6]  }
   0x5   :  { %s480_s8 = smov [#allocation2]   ;;  %s44_s11 = sshll.u32 %s628_s4, 4  ;;  %s45_s11 = int_to_ptr.vmem [resolvable:$true] %s44_s11 }
   0x6   :  { %29 = dma.vmem_to_smem %s27_s29, 16, %s480_s8, [#allocation4]  }
   0x7   :  { %s481_s12 = smov [#allocation7]  }
   0x8   :  { %47 = dma.vmem_to_smem %s45_s11, 16, %s481_s12, [#allocation6]  }
   0x9   :  { %471 = dma.done.wait [#allocation4], 16  }
   0xa   :  { %472 = vsyncadd [#allocation4], 4294967280 }
   0xb   :  { %473 = dma.done.wait [#allocation6], 32  }
   0xc   :  { %474 = vsyncadd [#allocation6], 4294967264 }
   0xd   :  { %60 = sfence }
   0xe   :  { %v61_v0 = vld [vmem:[%s624_s0] sm:$0xff]  ;;  %v62_v1 = vld [vmem:[%s624_s0 + $0x8] sm:$0xff]  ;;  %v63_v2 = vld [vmem:[%s624_s0 + $0x10] sm:$0xff]  ;;  %v66_v3 = vlaneseq  ;;  %vm195_vm8 = vcmask 1040384   ;;  %vm197_vm9 = vcmask 1042434   ;;  %vm199_vm11 = vcmask 1041408  }
   0xf   :  { %v64_v4 = vld [vmem:[%s624_s0 + $0x18] sm:$0xff]  ;;  %v552_v5 = vld [vmem:[%s625_s1] sm:$0xf]  ;;  %v76_v6 = vrot.slane %v61_v0, 4  ;;  %v82_v7 = vrot.slane %v62_v1, 4  ;;  %v88_v8 = vrot.slane %v63_v2, 4 }
  0x10   :  { %v67_v9 = vshrl.u32 %v66_v3, 7  ;;  %v68_v10 = vperm.slane %v552_v5, 0  ;;  %v69_v11 = vperm.slane %v552_v5, 1  ;;  %v70_v12 = vperm.slane %v552_v5, 2  ;;  %s279_s0 = sld [smem:[#allocation7]]  ;;  %s484_s2 = smov 0.0  }
  0x11   :  { %v71_v13 = vperm.slane %v552_v5, 3  ;;  %v77_v14 = vmax.f32 %v61_v0, %v76_v6  ;;  %v83_v15 = vmax.f32 %v62_v1, %v82_v7  ;;  %v89_v16 = vmax.f32 %v63_v2, %v88_v8  ;;  %s281_s1 = sld [smem:[#allocation5]] }
  0x12   :  { %vm558_vm0 = vcmp.eq.s32.totalorder %v67_v9, %v68_v10  ;;  %vm73_vm1 = vcmp.eq.s32.totalorder %v67_v9, %v69_v11  ;;  %vm74_vm2 = vcmp.eq.s32.totalorder %v67_v9, %v70_v12  ;;  %v94_v18 = vrot.slane %v64_v4, 4  ;;  %s364_s20 = sld [smem:[#allocation7 + $0x1]] }
  0x13   :  { %vm75_vm3 = vcmp.eq.s32.totalorder %v67_v9, %v71_v13  ;;  %v78_v19 = vrot.slane %v77_v14, 2  ;;  %v84_v20 = vrot.slane %v83_v15, 2  ;;  %v90_v21 = vrot.slane %v89_v16, 2  ;;  %s365_s21 = sld [smem:[#allocation5 + $0x1]] }
  0x14   :  { %v95_v22 = vmax.f32 %v64_v4, %v94_v18  ;;  %v149_v23 = vsel %vm73_vm1, %v62_v1, 0.0  ;;  %v150_v24 = vsel %vm74_vm2, %v63_v2, 0.0  ;;  %v151_v25 = vsel %vm75_vm3, %v64_v4, 0.0  ;;  %s366_s22 = sld [smem:[#allocation7 + $0x2]] }
  0x15   :  { %v79_v26 = vmax.f32 %v77_v14, %v78_v19  ;;  %v85_v27 = vmax.f32 %v83_v15, %v84_v20  ;;  %v91_v28 = vmax.f32 %v89_v16, %v90_v21  ;;  %v148_v30 = vsel %vm558_vm0, %v61_v0, 0.0  ;;  %s367_s23 = sld [smem:[#allocation5 + $0x2]] }
  0x16   :  { %v96_v29 = vrot.slane %v95_v22, 2  ;;  %v158_v31 = vrot.slane %v149_v23, 4  ;;  %v164_v32 = vrot.slane %v150_v24, 4  ;;  %v170_v36 = vrot.slane %v151_v25, 4  ;;  %s280_s24 = sld [smem:[#allocation2 + %s279_s0]] }
  0x17   :  { %v80_v33 = vrot.slane %v79_v26, 1  ;;  %v86_v34 = vrot.slane %v85_v27, 1  ;;  %v92_v35 = vrot.slane %v91_v28, 1  ;;  %v152_v42 = vrot.slane %v148_v30, 4  ;;  %s282_s25 = sld [smem:[#allocation2 + %s281_s1]] }
  0x18   :  { %v97_v37 = vmax.f32 %v95_v22, %v96_v29  ;;  %v159_v38 = vadd.f32 %v158_v31, %v149_v23  ;;  %v165_v44 = vadd.f32 %v164_v32, %v150_v24  ;;  %v171_v45 = vadd.f32 %v170_v36, %v151_v25  ;;  %s288_s26 = sld [smem:[#allocation2 + %s364_s20]] }
  0x19   :  { %v564_v39 = vmax.f32 %v79_v26, %v80_v33  ;;  %v566_v40 = vmax.f32 %v85_v27, %v86_v34  ;;  %v568_v41 = vmax.f32 %v91_v28, %v92_v35  ;;  %v153_v54 = vadd.f32 %v152_v42, %v148_v30  ;;  %s290_s27 = sld [smem:[#allocation2 + %s365_s21]] }
  0x1a   :  { %v98_v43 = vrot.slane %v97_v37, 1  ;;  %v160_v50 = vrot.slane %v159_v38, 2  ;;  %v166_v56 = vrot.slane %v165_v44, 2  ;;  %v172_v57 = vrot.slane %v171_v45, 2  ;;  %s296_s28 = sld [smem:[#allocation2 + %s366_s22]] }
  0x1b   :  { %v100_v46 = vsub.f32 %v61_v0, %v564_v39  ;;  %v101_v47 = vsub.f32 %v62_v1, %v566_v40  ;;  %v102_v48 = vsub.f32 %v63_v2, %v568_v41  ;;  %v154_v59 = vrot.slane %v153_v54, 2  ;;  %s298_s29 = sld [smem:[#allocation2 + %s367_s23]] }
  0x1c   :  { %v573_v49 = vmax.f32 %v97_v37, %v98_v43  ;;  %v161_v60 = vadd.f32 %v160_v50, %v159_v38  ;;  %v167_v61 = vadd.f32 %v166_v56, %v165_v44  ;;  %v173_v62 = vadd.f32 %v172_v57, %v171_v45  ;;  %s368_s30 = sld [smem:[#allocation7 + $0x3]] }
  0x1d   :  { %v104_v51 = vmul.f32 1.442695, %v100_v46  ;;  %v106_v52 = vmul.f32 1.442695, %v101_v47  ;;  %v108_v53 = vmul.f32 1.442695, %v102_v48  ;;  %v155_v0 = vadd.f32 %v154_v59, %v153_v54  ;;  %s283_s8 = ssub.f32 %s280_s24, %s282_s25 }
  0x1e   :  { %v103_v55 = vsub.f32 %v64_v4, %v573_v49  ;;  %v162_v1 = vrot.slane %v161_v60, 1  ;;  %v168_v6 = vrot.slane %v167_v61, 1  ;;  %v174_v7 = vrot.slane %v173_v62, 1  ;;  %s369_s9 = sld [smem:[#allocation5 + $0x3]]  ;;  %s325_s25 = sshll.u32 %s629_s5, 4  ;;  %s326_s25 = int_to_ptr.hbm [resolvable:$true] %s325_s25 }
  0x1f   :  { %383 = vpow2.f32 %v104_v51  ;;  %v156_v14 = vrot.slane %v155_v0, 1  ;;  %v482_v29 = vmov 0   ;;  %vm176_vm10 = vcmp.eq.s32.totalorder %v552_v5, 0  ;;  %s284_s10 = sadd.f32 1.0, %s283_s8  ;;  %s487_s5 = smov [#allocation11]  }
  0x20   :  { %385 = vpow2.f32 %v106_v52  ;;  %v110_v58 = vmul.f32 1.442695, %v103_v55  ;;  %v576_v15 = vadd.f32 %v162_v1, %v161_v60  ;;  %v578_v18 = vadd.f32 %v168_v6, %v167_v61  ;;  %s291_s11 = ssub.f32 %s288_s26, %s290_s27  ;;  %s485_s27 = smov [#allocation8]  }
  0x21   :  { %387 = vpow2.f32 %v108_v53  ;;  %v580_v19 = vadd.f32 %v174_v7, %v173_v62  ;;  %v157_v28 = vadd.f32 %v156_v14, %v155_v0  ;;  %v483_v57 = vmov 0.0   ;;  %s299_s12 = ssub.f32 %s296_s28, %s298_s29  ;;  %s285_s14 = smax.f32 %s484_s2, %s284_s10 }
  0x22   :  { %389 = vpow2.f32 %v110_v58  ;;  %vm232_vm4 = vcmp.eq.f32.partialorder %v576_v15, %v566_v40  ;;  %vm233_vm5 = vcmp.eq.f32.partialorder %v578_v18, %v568_v41  ;;  %v177_v58 = vsel %vm176_vm10, 10.0, %v483_v57  ;;  %s292_s3 = sadd.f32 1.0, %s291_s11  ;;  %s343_s10 = sshll.u32 %s631_s7, 4  ;;  %s344_s10 = int_to_ptr.hbm [resolvable:$true] %s343_s10 }
  0x23   :  { %vm234_vm6 = vcmp.eq.f32.partialorder %v580_v19, %v573_v49  ;;  %v236_v30 = vsel %vm232_vm4, 1, %v482_v29  ;;  %v237_v33 = vsel %vm233_vm5, 1, %v482_v29  ;;  %vm231_vm7 = vcmp.eq.f32.partialorder %v157_v28, %v564_v39  ;;  %s304_s13 = sld [smem:[#allocation2 + %s368_s30]]  ;;  %s334_s30 = sshll.u32 %s630_s6, 4  ;;  %s335_s30 = int_to_ptr.hbm [resolvable:$true] %s334_s30 }
  0x24   :  { %v238_v34 = vsel %vm234_vm6, 1, %v482_v29  ;;  %v239_v42 = vrot.slane %v236_v30, 7  ;;  %v240_v44 = vrot.slane %v237_v33, 6  ;;  %v235_v47 = vsel %vm231_vm7, 1, %v482_v29  ;;  %s300_s15 = sadd.f32 1.0, %s299_s12  ;;  %s293_s16 = smax.f32 %s484_s2, %s292_s3 }
  0x25   :  { %v384_v63 = vpop.eup %383  ;;  %v241_v45 = vrot.slane %v238_v34, 5  ;;  %vm178_vm12 = vcmp.eq.s32.totalorder %v552_v5, 1  ;;  %vm230_vm13 = vcmp.ge.s32.totalorder %v552_v5, 0  ;;  %vm180_vm15 = vcmp.eq.s32.totalorder %v552_v5, 2  ;;  %s306_s4 = sld [smem:[#allocation2 + %s369_s9]]  ;;  %s486_s12 = smov [#allocation9]  }
  0x26   :  { %v386_v2 = vpop.eup %385  ;;  %v112_v3 = vrot.slane %v384_v63, 4  ;;  %v242_v48 = vsel %vm195_vm8, %v235_v47, %v239_v42  ;;  %v179_v1 = vsel %vm178_vm12, 10.0, %v177_v58  ;;  %vm182_vm1 = vcmp.eq.s32.totalorder %v552_v5, 3  ;;  %s294_s17 = sadd.f32 %s293_s16, %s285_s14  ;;  %s301_s18 = smax.f32 %s484_s2, %s300_s15 }
  0x27   :  { %v388_v8 = vpop.eup %387  ;;  %v118_v4 = vrot.slane %v386_v2, 4  ;;  %v243_v50 = vsel %vm197_vm9, %v240_v44, %v241_v45 }
  0x28   :  { %v390_v9 = vpop.eup %389  ;;  %v113_v10 = vadd.f32 %v384_v63, %v112_v3  ;;  %v124_v11 = vrot.slane %v388_v8, 4  ;;  %v244_v54 = vsel %vm199_vm11, %v242_v48, %v243_v50  ;;  %s302_s0 = sadd.f32 %s301_s18, %s294_s17 }
  0x29   :  { %v119_v12 = vadd.f32 %v386_v2, %v118_v4  ;;  %v130_v13 = vrot.slane %v390_v9, 4  ;;  %vm245_vm14 = vcmp.ne.s32.totalorder %v244_v54, 0 }
  0x2a   :  { %v114_v16 = vrot.slane %v113_v10, 2  ;;  %v125_v17 = vadd.f32 %v388_v8, %v124_v11  ;;  %vm246_vm0 = vmand %vm230_vm13, %vm245_vm14 }
  0x2b   :  { %v120_v20 = vrot.slane %v119_v12, 2  ;;  %v131_v21 = vadd.f32 %v390_v9, %v130_v13  ;;  %s307_s19 = ssub.f32 %s304_s13, %s306_s4 }
  0x2c   :  { %v115_v22 = vadd.f32 %v114_v16, %v113_v10  ;;  %v126_v23 = vrot.slane %v125_v17, 2  ;;  %v247_v10 = vsel %vm246_vm0, 1.0, %v483_v57 }
  0x2d   :  { %v121_v24 = vadd.f32 %v120_v20, %v119_v12  ;;  %v132_v25 = vrot.slane %v131_v21, 2  ;;  %v249_v13 = vperm.slane %v247_v10, 0  ;;  %v251_v20 = vperm.slane %v247_v10, 2  ;;  %s308_s1 = sadd.f32 1.0, %s307_s19 }
  0x2e   :  { %v116_v26 = vrot.slane %v115_v22, 1  ;;  %v127_v27 = vadd.f32 %v126_v23, %v125_v17  ;;  %v252_v29 = vperm.slane %v247_v10, 3 }
  0x2f   :  { %v122_v31 = vrot.slane %v121_v24, 1  ;;  %v133_v32 = vadd.f32 %v132_v25, %v131_v21  ;;  %v260_v30 = vsel %vm195_vm8, %v251_v20, 0.0  ;;  %s309_s20 = smax.f32 %s484_s2, %s308_s1 }
  0x30   :  { %v117_v35 = vadd.f32 %v116_v26, %v115_v22  ;;  %v128_v36 = vrot.slane %v127_v27, 1  ;;  %v262_v33 = vsel %vm195_vm8, %v252_v29, 0.0  ;;  %s310_s21 = sadd.f32 %s309_s20, %s302_s0 }
  0x31   :  { %v123_v37 = vadd.f32 %v122_v31, %v121_v24  ;;  %v134_v38 = vrot.slane %v133_v32, 1 }
  0x32   :  { %v129_v43 = vadd.f32 %v128_v36, %v127_v27  ;;  %391 = vlog2.f32 %v117_v35  ;;  %s311_s22 = smul.f32 0.5, %s310_s21 }
  0x33   :  { %v135_v46 = vadd.f32 %v134_v38, %v133_v32  ;;  %393 = vlog2.f32 %v123_v37 }
  0x34   :  { %395 = vlog2.f32 %v129_v43  ;;  %313 = sst [smem:[#allocation11]] %s311_s22 }
  0x35   :  { %397 = vlog2.f32 %v135_v46 }
  0x38   :  { %v392_v51 = vpop.eup %391 }
  0x39   :  { %v394_v52 = vpop.eup %393  ;;  %v137_v53 = vmul.f32 0.6931472, %v392_v51 }
  0x3a   :  { %v396_v55 = vpop.eup %395  ;;  %v139_v56 = vmul.f32 0.6931472, %v394_v52 }
  0x3b   :  { %v398_v59 = vpop.eup %397  ;;  %v141_v60 = vmul.f32 0.6931472, %v396_v55  ;;  %v144_v61 = vadd.f32 %v137_v53, %v564_v39  ;;  %v181_v39 = vsel %vm180_vm15, 10.0, %v179_v1 }
  0x3c   :  { %v143_v62 = vmul.f32 0.6931472, %v398_v59  ;;  %v145_v63 = vadd.f32 %v139_v56, %v566_v40  ;;  %v183_v11 = vsel %vm182_vm1, 0.1, %v181_v39 }
  0x3d   :  { %v146_v0 = vadd.f32 %v141_v60, %v568_v41  ;;  %v184_v3 = vsub.f32 %v144_v61, %v157_v28 }
  0x3e   :  { %v147_v2 = vadd.f32 %v143_v62, %v573_v49  ;;  %v185_v6 = vsub.f32 %v145_v63, %v576_v15  ;;  %v250_v15 = vperm.slane %v247_v10, 1 }
  0x3f   :  { %v186_v7 = vsub.f32 %v146_v0, %v578_v18 }
  0x40   :  { %v187_v40 = vsub.f32 %v147_v2, %v580_v19  ;;  %v192_v8 = vrot.slane %v185_v6, 7  ;;  %v257_v19 = vsel %vm195_vm8, %v249_v13, 0.0  ;;  %v258_v24 = vsel %vm195_vm8, %v250_v15, 0.0 }
  0x41   :  { %v193_v4 = vrot.slane %v186_v7, 6  ;;  %v259_v28 = vadd.f32 %v258_v24, %v257_v19 }
  0x42   :  { %v194_v9 = vrot.slane %v187_v40, 5  ;;  %v196_v41 = vsel %vm195_vm8, %v184_v3, %v192_v8 }
  0x43   :  { %v261_v32 = vadd.f32 %v260_v30, %v259_v28 }
  0x44   :  { %v198_v49 = vsel %vm197_vm9, %v193_v4, %v194_v9 }
  0x45   :  { %v200_v12 = vsel %vm199_vm11, %v196_v41, %v198_v49  ;;  %v263_v34 = vadd.f32 %v262_v33, %v261_v32 }
  0x46   :  { %v202_v14 = vmul.f32 %v200_v12, %v183_v11 }
  0x48   :  { %v204_v16 = vperm.slane %v202_v14, 0  ;;  %v205_v17 = vperm.slane %v202_v14, 1  ;;  %v206_v18 = vperm.slane %v202_v14, 2  ;;  %v207_v5 = vperm.slane %v202_v14, 3 }
  0x4a   :  { %v212_v21 = vsel %vm195_vm8, %v204_v16, 0.0  ;;  %v213_v22 = vsel %vm195_vm8, %v205_v17, 0.0  ;;  %v215_v23 = vsel %vm195_vm8, %v206_v18, 0.0  ;;  %v217_v26 = vsel %vm195_vm8, %v207_v5, 0.0 }
  0x4b   :  { %v214_v25 = vadd.f32 %v213_v22, %v212_v21 }
  0x4d   :  { %v216_v27 = vadd.f32 %v215_v23, %v214_v25 }
  0x4f   :  { %v218_v31 = vadd.f32 %v217_v26, %v216_v27 }
  0x51   :  { %219 = vadd.xlane.f32.xlu0 %v218_v31 }
  0x59   :  { %264 = vadd.xlane.f32.xlu0 %v263_v34 }
  0xc4   :  { %v220_v35 = vpop.xlane.xlu0 %219 }
  0xc5   :  { %v221_v36 = vrot.slane %v220_v35, 4 }
  0xc7   :  { %v222_v37 = vadd.f32 %v221_v36, %v220_v35 }
  0xc9   :  { %v223_v38 = vrot.slane %v222_v37, 2 }
  0xcb   :  { %v224_v42 = vadd.f32 %v223_v38, %v222_v37 }
  0xcc   :  { %v265_v43 = vpop.xlane.xlu0 %264 }
  0xcd   :  { %v266_v44 = vrot.slane %v265_v43, 4  ;;  %v225_v45 = vrot.slane %v224_v42, 1 }
  0xcf   :  { %v267_v46 = vadd.f32 %v266_v44, %v265_v43  ;;  %v226_v47 = vadd.f32 %v225_v45, %v224_v42 }
  0xd1   :  { %v268_v48 = vrot.slane %v267_v46, 2  ;;  %370 = vpush %v226_v47 }
  0xd3   :  { %v269_v50 = vadd.f32 %v268_v48, %v267_v46 }
  0xd5   :  { %v270_v51 = vrot.slane %v269_v50, 1 }
  0xd7   :  { %v271_v52 = vadd.f32 %v270_v51, %v269_v50 }
  0xd9   :  { %372 = vpush %v271_v52 }
 0x102   :  { %s371_s26 = spop %370 }
 0x103   :  { %229 = sst [smem:[#allocation8]] %s371_s26 }
 0x104   :  { %328 = dma.smem_to_hbm %s485_s27, 16, %s326_s25, [#allocation3]  }
 0x10a   :  { %s373_s11 = spop %372 }
 0x10b   :  { %274 = sst [smem:[#allocation9]] %s373_s11 }
 0x10c   :  { %337 = dma.smem_to_hbm %s486_s12, 16, %s335_s30, [#allocation10]  }
 0x10d   :  { %346 = dma.smem_to_hbm %s487_s5, 16, %s344_s10, [#allocation10]  }
 0x10e   :  { %475 = dma.done.wait [#allocation3], 16  }
 0x10f   :  { %476 = vsyncadd [#allocation3], 4294967280 }
 0x110   :  { %477 = dma.done.wait [#allocation10], 32  }
 0x111   :  { %478 = vsyncadd [#allocation10], 4294967264 }
 0x112   :  { %359 = sfence }
 0x113   :  { %360 = vsyncpa [#allocation3], 1 }
 0x114   :  { %361 = vsyncpa [#allocation10], 1 }
 0x115   :  { %362 = vsyncpa [#allocation4], 1 }
 0x116   :  { %363 = vsyncpa [#allocation6], 1 }

</bundles_post_ra>
